<compile_context>
chip_gen: v6e
topology: v6e:2x2x1
jax: 0.10.0
libtpu: 0.0.40
codegen_flags: <defaults>
</compile_context>

<pallas_src>
import jax
import jax.numpy as jnp
from jax.experimental import pallas as pl
from jax.experimental.pallas import tpu as pltpu


def _round_up(n, m):
    return ((n + m - 1) // m) * m


def _cbf_mlp_kernel(x_ref, w1_ref, b1_ref, w2_ref, b2_ref, wout_ref, bout_ref,
                    out_ref):
    """Fused 3-layer MLP with folded output projection on one [TB, ...] batch tile."""
    x = x_ref[...].astype(jnp.bfloat16)                                  # [TB, x_dim]
    h1 = jnp.dot(x, w1_ref[...], preferred_element_type=jnp.float32) + b1_ref[...]
    h1 = jnp.maximum(h1, 0.0).astype(jnp.bfloat16)                       # ReLU (f32) -> bf16
    h2 = jnp.dot(h1, w2_ref[...], preferred_element_type=jnp.float32) + b2_ref[...]
    h2 = jnp.maximum(h2, 0.0).astype(jnp.bfloat16)                       # ReLU (f32) -> bf16
    # Single matmul producing [xv_padded | y_padded]: one lane-dense store.
    out = jnp.dot(h2, wout_ref[...], preferred_element_type=jnp.float32) + bout_ref[...]
    out_ref[...] = out.astype(out_ref.dtype)                             # [TB, H_pad + Y_pad]


def init_params(key, x_dim, hidden, y_dim):
    """Deterministic kaiming-normal weights ([in,out]) and uniform(-1/sqrt(fan_in)) biases."""
    ks = jax.random.split(key, 8)

    def kaiming(k, fan_in, fan_out):
        std = jnp.sqrt(2.0 / fan_in)
        return (std * jax.random.normal(k, (fan_in, fan_out))).astype(jnp.float32)

    def bias(k, fan_in, fan_out):
        bound = 1.0 / jnp.sqrt(float(fan_in))
        return jax.random.uniform(k, (1, fan_out), jnp.float32, -bound, bound)

    return {
        "w1": kaiming(ks[0], x_dim, hidden),  "b1": bias(ks[1], x_dim, hidden),
        "w2": kaiming(ks[2], hidden, hidden), "b2": bias(ks[3], hidden, hidden),
        "w3": kaiming(ks[4], hidden, hidden), "b3": bias(ks[5], hidden, hidden),
        "wp": kaiming(ks[6], hidden, y_dim),  "bp": bias(ks[7], hidden, y_dim),
    }


def pack_params(params):
    """Fold wp into w3, zero-pad feature dims to 128 lanes, cast weights to bf16."""
    x_dim, hidden = params["w1"].shape
    y_dim = params["wp"].shape[1]
    h_pad = _round_up(hidden, 128)
    y_pad = _round_up(y_dim, 128)

    def padw(w, rows, cols):
        return jnp.pad(w, ((0, rows - w.shape[0]), (0, cols - w.shape[1])))

    w1 = padw(params["w1"], x_dim, h_pad)
    b1 = padw(params["b1"], 1, h_pad)
    w2 = padw(params["w2"], h_pad, h_pad)
    b2 = padw(params["b2"], 1, h_pad)

    # Fold the latent->ambient projection into the last layer (removes the
    # xv -> y serial MXU dependency).
    w3p = params["w3"] @ params["wp"]                 # [hidden, y_dim]
    b3p = params["b3"] @ params["wp"] + params["bp"]  # [1, y_dim]

    w_out = jnp.concatenate(
        [padw(params["w3"], h_pad, h_pad), padw(w3p, h_pad, y_pad)], axis=1)
    b_out = jnp.concatenate([padw(params["b3"], 1, h_pad), padw(b3p, 1, y_pad)],
                            axis=1)

    return {
        "w1": w1.astype(jnp.bfloat16), "b1": b1.astype(jnp.float32),
        "w2": w2.astype(jnp.bfloat16), "b2": b2.astype(jnp.float32),
        "w_out": w_out.astype(jnp.bfloat16), "b_out": b_out.astype(jnp.float32),
        "hidden": hidden, "h_pad": h_pad, "y_dim": y_dim, "y_pad": y_pad,
    }


def cbf_qcqp_net_forward(x, packed, xo_dim, xc_dim, *, tb=256):
    """x: [B, x_dim, 1] float32 (matches the PyTorch module's input)."""
    x2 = jnp.squeeze(x, axis=-1)                                        # [B, x_dim]  (glue)
    B, x_dim = x2.shape
    hidden, h_pad = packed["hidden"], packed["h_pad"]
    y_dim = packed["y_dim"]
    out_cols = packed["w_out"].shape[1]                                 # h_pad + y_pad

    # Batch tile: multiple of 8 sublanes; 256 rows once the batch is large enough.
    TB = tb if B >= tb else max(8, _round_up(B, 8))
    B_pad = _round_up(B, TB)
    x_p = jnp.pad(x2, ((0, B_pad - B), (0, 0))) if B_pad != B else x2

    grid = (B_pad // TB,)
    out = pl.pallas_call(
        _cbf_mlp_kernel,
        out_shape=jax.ShapeDtypeStruct((B_pad, out_cols), jnp.float32),
        grid=grid,
        in_specs=[
            pl.BlockSpec((TB, x_dim), lambda i: (i, 0)),        # streamed per tile
            pl.BlockSpec((x_dim, h_pad), lambda i: (0, 0)),     # resident weights
            pl.BlockSpec((1, h_pad), lambda i: (0, 0)),
            pl.BlockSpec((h_pad, h_pad), lambda i: (0, 0)),
            pl.BlockSpec((1, h_pad), lambda i: (0, 0)),
            pl.BlockSpec((h_pad, out_cols), lambda i: (0, 0)),
            pl.BlockSpec((1, out_cols), lambda i: (0, 0)),
        ],
        out_specs=pl.BlockSpec((TB, out_cols), lambda i: (i, 0)),
        compiler_params=pltpu.CompilerParams(
            dimension_semantics=("parallel",)),                 # 2-TC sharding on v7x
    )(
        x_p,
        packed["w1"], packed["b1"],
        packed["w2"], packed["b2"],
        packed["w_out"], packed["b_out"],
    )

    xv = out[:B, :hidden]                                               # [B, hidden]
    y = out[:B, h_pad:h_pad + y_dim]                                    # [B, y_dim]
    xc = x2[:, xo_dim:xo_dim + xc_dim]                                  # [B, xc_dim] (glue slice)
    # TODO(synk): RAYEN ConstraintModule's QCQP feasibility projection (interior-point
    # shift + per-constraint scaling driven by xc) has no clean Pallas equivalent; y is
    # the module's internal linear-map output, xc is returned for downstream use.
    return y, xv, xc


if __name__ == "__main__":
    # Small shapes consistent with the module: x_dim = xo_dim + xc_dim.
    B, xo_dim, xc_dim, hidden, y_dim = 2, 4, 4, 32, 8
    x_dim = xo_dim + xc_dim

    key = jax.random.PRNGKey(0)
    k_params, k_x = jax.random.split(key)
    params = init_params(k_params, x_dim, hidden, y_dim)
    packed = pack_params(params)
    x = jax.random.normal(k_x, (B, x_dim, 1), dtype=jnp.float32)

    y, xv, xc = cbf_qcqp_net_forward(x, packed, xo_dim, xc_dim)
    jax.block_until_ready((y, xv, xc))

    assert y.shape == (B, y_dim)
    assert xv.shape == (B, hidden)
    assert xc.shape == (B, xc_dim)
    assert bool(jnp.all(jnp.isfinite(y))) and bool(jnp.all(jnp.isfinite(xv)))
    print("KERNEL_OK")
</pallas_src>

<mosaic_0001>
module attributes {stable_mosaic.version = 11 : i64} {
  func.func @_cbf_mlp_kernel(%arg0: i32, %arg1: memref<8x8xf32, #tpu.memory_space<vmem>>, %arg2: memref<8x128xbf16, #tpu.memory_space<vmem>>, %arg3: memref<1x128xf32, #tpu.memory_space<vmem>>, %arg4: memref<128x128xbf16, #tpu.memory_space<vmem>>, %arg5: memref<1x128xf32, #tpu.memory_space<vmem>>, %arg6: memref<128x256xbf16, #tpu.memory_space<vmem>>, %arg7: memref<1x256xf32, #tpu.memory_space<vmem>>, %arg8: memref<8x256xf32, #tpu.memory_space<vmem>>) attributes {dimension_semantics = [#tpu.dimension_semantics<parallel>], iteration_bounds = array<i64: 1>, scalar_prefetch = 0 : i64, scratch_operands = 0 : i64, tpu.core_type = #tpu.core_type<tc>, window_params = [{transform_indices = @transform_0, window_bounds = array<i64: 8, 8>}, {pipeline_mode = #tpu.pipeline_mode<synchronous>, transform_indices = @transform_1, window_bounds = array<i64: 8, 128>}, {pipeline_mode = #tpu.pipeline_mode<synchronous>, transform_indices = @transform_2, window_bounds = array<i64: 1, 128>}, {pipeline_mode = #tpu.pipeline_mode<synchronous>, transform_indices = @transform_3, window_bounds = array<i64: 128, 128>}, {pipeline_mode = #tpu.pipeline_mode<synchronous>, transform_indices = @transform_4, window_bounds = array<i64: 1, 128>}, {pipeline_mode = #tpu.pipeline_mode<synchronous>, transform_indices = @transform_5, window_bounds = array<i64: 128, 256>}, {pipeline_mode = #tpu.pipeline_mode<synchronous>, transform_indices = @transform_6, window_bounds = array<i64: 1, 256>}, {transform_indices = @transform_7, window_bounds = array<i64: 8, 256>}]} {
    %c0 = arith.constant 0 : index
    %c0_0 = arith.constant 0 : index
    %0 = vector.load %arg1[%c0, %c0_0] : memref<8x8xf32, #tpu.memory_space<vmem>>, vector<8x8xf32>
    %1 = arith.truncf %0 : vector<8x8xf32> to vector<8x8xbf16>
    %c0_1 = arith.constant 0 : index
    %c0_2 = arith.constant 0 : index
    %2 = vector.load %arg2[%c0_1, %c0_2] : memref<8x128xbf16, #tpu.memory_space<vmem>>, vector<8x128xbf16>
    %cst = arith.constant dense<0.000000e+00> : vector<8x128xf32>
    %3 = tpu.matmul %1, %2, %cst {dimension_numbers = #tpu.dot_dimension_numbers<[1], [0], [0], [1], [0, 0, 1, 1], [], []>} : vector<8x8xbf16>, vector<8x128xbf16>, vector<8x128xf32> -> vector<8x128xf32>
    %c0_3 = arith.constant 0 : index
    %c0_4 = arith.constant 0 : index
    %4 = vector.load %arg3[%c0_3, %c0_4] : memref<1x128xf32, #tpu.memory_space<vmem>>, vector<1x128xf32>
    %5 = vector.broadcast %4 : vector<1x128xf32> to vector<8x128xf32>
    %6 = arith.addf %3, %5 : vector<8x128xf32>
    %cst_5 = arith.constant 0.000000e+00 : f32
    %7 = vector.broadcast %cst_5 : f32 to vector<8x128xf32>
    %8 = arith.maximumf %6, %7 : vector<8x128xf32>
    %9 = arith.truncf %8 : vector<8x128xf32> to vector<8x128xbf16>
    %c0_6 = arith.constant 0 : index
    %c0_7 = arith.constant 0 : index
    %10 = vector.load %arg4[%c0_6, %c0_7] : memref<128x128xbf16, #tpu.memory_space<vmem>>, vector<128x128xbf16>
    %cst_8 = arith.constant dense<0.000000e+00> : vector<8x128xf32>
    %11 = tpu.matmul %9, %10, %cst_8 {dimension_numbers = #tpu.dot_dimension_numbers<[1], [0], [0], [1], [0, 0, 1, 1], [], []>} : vector<8x128xbf16>, vector<128x128xbf16>, vector<8x128xf32> -> vector<8x128xf32>
    %c0_9 = arith.constant 0 : index
    %c0_10 = arith.constant 0 : index
    %12 = vector.load %arg5[%c0_9, %c0_10] : memref<1x128xf32, #tpu.memory_space<vmem>>, vector<1x128xf32>
    %13 = vector.broadcast %12 : vector<1x128xf32> to vector<8x128xf32>
    %14 = arith.addf %11, %13 : vector<8x128xf32>
    %cst_11 = arith.constant 0.000000e+00 : f32
    %15 = vector.broadcast %cst_11 : f32 to vector<8x128xf32>
    %16 = arith.maximumf %14, %15 : vector<8x128xf32>
    %17 = arith.truncf %16 : vector<8x128xf32> to vector<8x128xbf16>
    %c0_12 = arith.constant 0 : index
    %c0_13 = arith.constant 0 : index
    %18 = vector.load %arg6[%c0_12, %c0_13] : memref<128x256xbf16, #tpu.memory_space<vmem>>, vector<128x256xbf16>
    %cst_14 = arith.constant dense<0.000000e+00> : vector<8x256xf32>
    %19 = tpu.matmul %17, %18, %cst_14 {dimension_numbers = #tpu.dot_dimension_numbers<[1], [0], [0], [1], [0, 0, 1, 1], [], []>} : vector<8x128xbf16>, vector<128x256xbf16>, vector<8x256xf32> -> vector<8x256xf32>
    %c0_15 = arith.constant 0 : index
    %c0_16 = arith.constant 0 : index
    %20 = vector.load %arg7[%c0_15, %c0_16] : memref<1x256xf32, #tpu.memory_space<vmem>>, vector<1x256xf32>
    %21 = vector.broadcast %20 : vector<1x256xf32> to vector<8x256xf32>
    %22 = arith.addf %19, %21 : vector<8x256xf32>
    %c0_17 = arith.constant 0 : index
    %c0_18 = arith.constant 0 : index
    %23 = vector.load %arg8[%c0_17, %c0_18] : memref<8x256xf32, #tpu.memory_space<vmem>>, vector<8x256xf32>
    tpu.vector_store %arg8[%c0_17, %c0_18], %22 {strides = array<i32>} : memref<8x256xf32, #tpu.memory_space<vmem>>, vector<8x256xf32>,
    return
  }
  func.func @transform_0(%arg0: i32) -> (i32, i32) {
    %c0_i32 = arith.constant 0 : i32
    %c0_i32_0 = arith.constant 0 : i32
    return %arg0, %c0_i32 : i32, i32
  }
  func.func @transform_1(%arg0: i32) -> (i32, i32) {
    %c0_i32 = arith.constant 0 : i32
    %c0_i32_0 = arith.constant 0 : i32
    %c0_i32_1 = arith.constant 0 : i32
    return %c0_i32, %c0_i32_0 : i32, i32
  }
  func.func @transform_2(%arg0: i32) -> (i32, i32) {
    %c0_i32 = arith.constant 0 : i32
    %c0_i32_0 = arith.constant 0 : i32
    %c0_i32_1 = arith.constant 0 : i32
    return %c0_i32, %c0_i32_0 : i32, i32
  }
  func.func @transform_3(%arg0: i32) -> (i32, i32) {
    %c0_i32 = arith.constant 0 : i32
    %c0_i32_0 = arith.constant 0 : i32
    %c0_i32_1 = arith.constant 0 : i32
    return %c0_i32, %c0_i32_0 : i32, i32
  }
  func.func @transform_4(%arg0: i32) -> (i32, i32) {
    %c0_i32 = arith.constant 0 : i32
    %c0_i32_0 = arith.constant 0 : i32
    %c0_i32_1 = arith.constant 0 : i32
    return %c0_i32, %c0_i32_0 : i32, i32
  }
  func.func @transform_5(%arg0: i32) -> (i32, i32) {
    %c0_i32 = arith.constant 0 : i32
    %c0_i32_0 = arith.constant 0 : i32
    %c0_i32_1 = arith.constant 0 : i32
    return %c0_i32, %c0_i32_0 : i32, i32
  }
  func.func @transform_6(%arg0: i32) -> (i32, i32) {
    %c0_i32 = arith.constant 0 : i32
    %c0_i32_0 = arith.constant 0 : i32
    %c0_i32_1 = arith.constant 0 : i32
    return %c0_i32, %c0_i32_0 : i32, i32
  }
  func.func @transform_7(%arg0: i32) -> (i32, i32) {
    %c0_i32 = arith.constant 0 : i32
    %c0_i32_0 = arith.constant 0 : i32
    return %arg0, %c0_i32 : i32, i32
  }
}

</mosaic_0001>

<bundles_post_ra>
// kernel: tpu_custom_call.1
= control target key start
LH: loop header
LB: loop body
LE: loop exit
PB: predicated region body
PF: predicated region fallthrough
CT: control target
= control target key end

     0   :  { %12 = vsyncpa [#allocation3], 0  ;;  %s712_s0 = inlined_call_operand.hbm [shape: f32[8,8], index: 0, kind: input, shape index: {}]   ;;  %s713_s1 = inlined_call_operand.hbm [shape: bf16[8,128], index: 1, kind: input, shape index: {}]   ;;  %s714_s2 = inlined_call_operand.vmem [shape: f32[1,128], index: 2, kind: input, shape index: {}]   ;;  %s715_s3 = inlined_call_operand.hbm [shape: bf16[128,128], index: 3, kind: input, shape index: {}]   ;;  %s716_s4 = inlined_call_operand.vmem [shape: f32[1,128], index: 4, kind: input, shape index: {}]   ;;  %s717_s5 = inlined_call_operand.hbm [shape: bf16[128,256], index: 5, kind: input, shape index: {}]   ;;  %s718_s6 = inlined_call_operand.vmem [shape: f32[1,256], index: 6, kind: input, shape index: {}]   ;;  %s719_s7 = inlined_call_operand.hbm [shape: f32[8,256], index: 7, kind: output, shape index: {}]  }
   0x1   :  { %13 = vsyncpa [#allocation6], 0 }
   0x2   :  { %14 = vsyncpa [#allocation9], 0 }
   0x3   :  { %15 = vsyncpa [#allocation4], 0  ;;  %s636_s24 = smov [#allocation5]   ;;  %s637_s26 = smov [#allocation2]  }
   0x4   :  { %s32_s25 = sshll.u32 %s636_s24, 4  ;;  %s22_s27 = sshll.u32 %s637_s26, 4  ;;  %s33_s25 = int_to_ptr.vmem [resolvable:$true] %s32_s25  ;;  %s23_s27 = int_to_ptr.vmem [resolvable:$true] %s22_s27 }
   0x5   :  { %s536_s28 = scalar_lea.vmem %s33_s25, 64  ;;  %p541_p1 = scmp.lt.s32.totalorder %s33_s25, %s33_s25 }
   0x6   :  { %p537_p0 = scmp.ne.s32.totalorder %s33_s25, %s536_s28  ;;  %p542_p2 = scmp.lt.s32.totalorder %s536_s28, %s536_s28 }
   0x8   :  { %p543_p3 = por %p542_p2, %p541_p1 }
   0xa   :  { %p544_p4 = pnand %p543_p3, %p537_p0 }
   0xc   :  { %547 = shalt.err (!%p544_p4)
}
   0xd   :  { %35 = dma.hbm_to_vmem [thread:$0]  %s713_s1, 64, %s33_s25, [#allocation6]  }
   0xe   :  { %s556_s8 = scalar_lea.vmem %s23_s27, 128  ;;  %p561_p6 = scmp.lt.s32.totalorder %s23_s27, %s23_s27 }
   0xf   :  { %p557_p5 = scmp.ne.s32.totalorder %s23_s27, %s556_s8  ;;  %p562_p7 = scmp.lt.s32.totalorder %s556_s8, %s556_s8 }
  0x11   :  { %p563_p8 = por %p562_p7, %p561_p6 }
  0x13   :  { %p564_p9 = pnand %p563_p8, %p557_p5 }
  0x15   :  { %567 = shalt.err (!%p564_p9)
}
  0x16   :  { %25 = dma.hbm_to_vmem [thread:$0]  %s712_s0, 128, %s23_s27, [#allocation3]  }
  0x17   :  { %s638_s11 = smov [#allocation7]  }
  0x18   :  { %s43_s12 = sshll.u32 %s638_s11, 4  ;;  %s44_s12 = int_to_ptr.vmem [resolvable:$true] %s43_s12 }
  0x19   :  { %s576_s13 = scalar_lea.vmem %s44_s12, 1024  ;;  %p581_p11 = scmp.lt.s32.totalorder %s44_s12, %s44_s12 }
  0x1a   :  { %p577_p10 = scmp.ne.s32.totalorder %s44_s12, %s576_s13  ;;  %p582_p12 = scmp.lt.s32.totalorder %s576_s13, %s576_s13 }
  0x1c   :  { %p583_p13 = por %p582_p12, %p581_p11 }
  0x1e   :  { %p584_p0 = pnand %p583_p13, %p577_p10 }
  0x20   :  { %587 = shalt.err (!%p584_p0)
}
  0x21   :  { %s639_s1 = smov 64   ;;  %s640_s14 = smov 4  }
  0x22   :  { %49 = dma.hbm_to_vmem [thread:$0]  %s715_s3, 1024, %s44_s12, [#allocation6], %s639_s1, %s639_s1, %s640_s14  }
  0x23   :  { %s641_s17 = smov [#allocation8]  }
  0x24   :  { %s57_s18 = sshll.u32 %s641_s17, 4  ;;  %s58_s18 = int_to_ptr.vmem [resolvable:$true] %s57_s18 }
  0x25   :  { %s596_s0 = scalar_lea.vmem %s58_s18, 2048  ;;  %p601_p2 = scmp.lt.s32.totalorder %s58_s18, %s58_s18 }
  0x26   :  { %p597_p1 = scmp.ne.s32.totalorder %s58_s18, %s596_s0  ;;  %p602_p3 = scmp.lt.s32.totalorder %s596_s0, %s596_s0 }
  0x28   :  { %p603_p4 = por %p602_p3, %p601_p2 }
  0x2a   :  { %p604_p5 = pnand %p603_p4, %p597_p1 }
  0x2c   :  { %607 = shalt.err (!%p604_p5)
}
  0x2d   :  { %s642_s19 = smov 128   ;;  %s643_s20 = smov 8  }
  0x2e   :  { %63 = dma.hbm_to_vmem [thread:$0]  %s717_s5, 2048, %s58_s18, [#allocation9], %s642_s19, %s642_s19, %s643_s20  }
  0x2f   :  { %628 = dma.done.wait [#allocation3], 128  }
  0x30   :  { %629 = vsyncadd [#allocation3], 4294967168 }
  0x31   :  { %630 = dma.done.wait [#allocation6], 1088  }
  0x32   :  { %631 = vsyncadd [#allocation6], 4294966208 }
  0x33   :  { %632 = dma.done.wait [#allocation9], 2048  }
  0x34   :  { %633 = vsyncadd [#allocation9], 4294965248  ;;  %v644_v0 = vmov 0.0   ;;  %vm645_vm0 = vmmov 0   ;;  %vm93_vm1 = vcmask 1043456   ;;  %v79_v2 = vld [vmem:[#allocation2] sm:$0xff]  ;;  %v270_v46 = vlaneseq }
  0x35   :  { %458 = vmatprep.subr.bf16.mxu0 %v644_v0  ;;  %460 = vmatprep.mubr.msk.bf16.mxu0 %vm645_vm0, %v644_v0  ;;  %v81_v1 = vld [vmem:[#allocation5] sm:$0xf]  ;;  %v80_v4 = vpack.c.bf16 %v79_v2, %v79_v2  ;;  %vm89_vm2 = vcmask 64512   ;;  %v497_v6 = vld [vmem:[#allocation7 + $0x30] sm:$0xff]   ;;  %v498_v7 = vld [vmem:[#allocation7 + $0x28] sm:$0xff]   ;;  %v646_v37 = vmov 0  }
  0x36   :  { %464 = vmatprep.subr.bf16.mxu1 %v644_v0  ;;  %480 = vmatprep.mubr.msk.bf16.mxu1 %vm645_vm0, %v644_v0  ;;  %v95_v3 = vsel %vm93_vm1, %v81_v1, 0  ;;  %v496_v5 = vld [vmem:[#allocation7 + $0x38] sm:$0xff]   ;;  %v499_v8 = vld [vmem:[#allocation7 + $0x20] sm:$0xff]   ;;  %v501_v10 = vld [vmem:[#allocation7 + $0x10] sm:$0xff]   ;;  %v271_v47 = vshrl.u32 %v270_v46, 7 }
  0x37   :  { %459 = vmatpush3.bf16.msra.mxu0 %v95_v3  ;;  %465 = vmatpush3.bf16.msra.mxu1 %v496_v5  ;;  %v500_v9 = vld [vmem:[#allocation7 + $0x18] sm:$0xff]   ;;  %v502_v11 = vld [vmem:[#allocation7 + $0x8] sm:$0xff]   ;;  %v503_v12 = vld [vmem:[#allocation7] sm:$0xff]  }
  0x38   :  { %466 = vmatprep.subr.bf16.mxu1 %v644_v0  ;;  %v504_v13 = vld [vmem:[#allocation8 + $0x70] ss:$8 sps:$4 sm:$0xff]   ;;  %v506_v14 = vld [vmem:[#allocation8 + $0x74] ss:$8 sps:$4 sm:$0xff]   ;;  %v509_v15 = vld [vmem:[#allocation8 + $0x64] ss:$8 sps:$4 sm:$0xff]  }
  0x39   :  { %360 = vmatprep.subr.bf16.mxu0 %v506_v14  ;;  %v507_v16 = vld [vmem:[#allocation8 + $0x60] ss:$8 sps:$4 sm:$0xff]   ;;  %v512_v17 = vld [vmem:[#allocation8 + $0x54] ss:$8 sps:$4 sm:$0xff]   ;;  %v510_v18 = vld [vmem:[#allocation8 + $0x50] ss:$8 sps:$4 sm:$0xff]  }
  0x3a   :  { %461 = vmatmul.mubr.msk.bf16.vlgmr.msra.gmra.mxu0 %vm89_vm2, %v80_v4  ;;  %v515_v19 = vld [vmem:[#allocation8 + $0x44] ss:$8 sps:$4 sm:$0xff]   ;;  %v513_v20 = vld [vmem:[#allocation8 + $0x40] ss:$8 sps:$4 sm:$0xff]   ;;  %v518_v21 = vld [vmem:[#allocation8 + $0x34] ss:$8 sps:$4 sm:$0xff]  }
  0x3b   :  { %467 = vmatpush3.bf16.msra.mxu1 %v497_v6  ;;  %361 = vmatpush1.bf16.msra.mxu0 %v504_v13  ;;  %v516_v22 = vld [vmem:[#allocation8 + $0x30] ss:$8 sps:$4 sm:$0xff]   ;;  %v521_v23 = vld [vmem:[#allocation8 + $0x24] ss:$8 sps:$4 sm:$0xff]   ;;  %v519_v24 = vld [vmem:[#allocation8 + $0x20] ss:$8 sps:$4 sm:$0xff]  }
  0x3c   :  { %468 = vmatprep.subr.bf16.mxu1 %v644_v0  ;;  %362 = vmatprep.subr.bf16.mxu0 %v509_v15  ;;  %v524_v25 = vld [vmem:[#allocation8 + $0x14] ss:$8 sps:$4 sm:$0xff]   ;;  %v522_v26 = vld [vmem:[#allocation8 + $0x10] ss:$8 sps:$4 sm:$0xff]   ;;  %v527_v35 = vld [vmem:[#allocation8 + $0x4] ss:$8 sps:$4 sm:$0xff]  }
  0x3d   :  { %v420_v27 = vld [vmem:[%s714_s2] ss:$0 sm:$0xff]  ;;  %v525_v36 = vld [vmem:[#allocation8] ss:$8 sps:$4 sm:$0xff]   ;;  %392 = vmatprep.mubr.bf16.mxu0 %v646_v37  ;;  %v272_v48 = vsub.s32 0, %v271_v47  ;;  %v276_v50 = vsub.s32 1, %v271_v47 }
  0x3e   :  { %v422_v38 = vld [vmem:[%s716_s4] ss:$0 sm:$0xff]  ;;  %s647_s4 = smov [#allocation10]  }
  0x3f   :  { %469 = vmatpush3.bf16.msra.mxu1 %v498_v7  ;;  %363 = vmatpush1.bf16.msra.mxu0 %v507_v16  ;;  %v268_v49 = vld [vmem:[%s718_s6] sm:$0x3]  ;;  %s409_s26 = sshll.u32 %s647_s4, 4  ;;  %s410_s26 = int_to_ptr.vmem [resolvable:$true] %s409_s26 }
  0x40   :  { %470 = vmatprep.subr.bf16.mxu1 %v644_v0  ;;  %364 = vmatprep.subr.bf16.mxu0 %v512_v17  ;;  %v273_v51 = vrot.slane %v268_v49, %v272_v48  ;;  %v277_v52 = vrot.slane %v268_v49, %v276_v50  ;;  %s608_s27 = scalar_lea.vmem %s410_s26, 256  ;;  %p613_p7 = scmp.lt.s32.totalorder %s410_s26, %s410_s26 }
  0x41   :  { %p609_p6 = scmp.ne.s32.totalorder %s410_s26, %s608_s27  ;;  %p614_p8 = scmp.lt.s32.totalorder %s608_s27, %s608_s27 }
  0x43   :  { %471 = vmatpush3.bf16.msra.mxu1 %v499_v8  ;;  %365 = vmatpush1.bf16.msra.mxu0 %v510_v18  ;;  %p615_p9 = por %p614_p8, %p613_p7 }
  0x44   :  { %472 = vmatprep.subr.bf16.mxu1 %v644_v0  ;;  %366 = vmatprep.subr.bf16.mxu0 %v515_v19 }
  0x45   :  { %p616_p10 = pnand %p615_p9, %p609_p6 }
  0x47   :  { %473 = vmatpush3.bf16.msra.mxu1 %v500_v9  ;;  %367 = vmatpush1.bf16.msra.mxu0 %v513_v20 }
  0x48   :  { %474 = vmatprep.subr.bf16.mxu1 %v644_v0  ;;  %368 = vmatprep.subr.bf16.mxu0 %v518_v21 }
  0x4b   :  { %475 = vmatpush3.bf16.msra.mxu1 %v501_v10  ;;  %369 = vmatpush1.bf16.msra.mxu0 %v516_v22 }
  0x4c   :  { %476 = vmatprep.subr.bf16.mxu1 %v644_v0  ;;  %370 = vmatprep.subr.bf16.mxu0 %v521_v23 }
  0x4f   :  { %477 = vmatpush3.bf16.msra.mxu1 %v502_v11  ;;  %371 = vmatpush1.bf16.msra.mxu0 %v519_v24 }
  0x50   :  { %478 = vmatprep.subr.bf16.mxu1 %v644_v0  ;;  %372 = vmatprep.subr.bf16.mxu0 %v524_v25 }
  0x53   :  { %479 = vmatpush3.bf16.msra.mxu1 %v503_v12  ;;  %373 = vmatpush1.bf16.msra.mxu0 %v522_v26 }
  0x54   :  { %374 = vmatprep.subr.bf16.mxu0 %v527_v35 }
  0x57   :  { %375 = vmatpush1.bf16.msra.mxu0 %v525_v36 }
  0xfa   :  { %v131_v28 = vpop.f32.mrf.mxu0 }
  0xfb   :  { %v132_v29 = vadd.f32 %v420_v27, %v131_v28 }
  0xfc   :  { %v462_v30 = vpop.f32.mrf.mxu0 }
  0xfd   :  { %v137_v31 = vmax.f32 %v132_v29, 0.0 }
  0xfe   :  { %v134_v32 = vpop.f32.mrf.mxu0 }
  0xff   :  { %v138_v33 = vpack.c.bf16 %v137_v31, %v137_v31 }
 0x100   :  { %v463_v34 = vpop.f32.mrf.mxu0 }
 0x101   :  { %481 = vmatmul.mubr.bf16.vlgmr.msra.gmra.mxu1 %v138_v33 }
 0x1c1   :  { %v244_v39 = vpop.f32.mrf.mxu1 }
 0x1c2   :  { %v245_v40 = vadd.f32 %v422_v38, %v244_v39 }
 0x1c3   :  { %v482_v41 = vpop.f32.mrf.mxu1 }
 0x1c4   :  { %v250_v42 = vmax.f32 %v245_v40, 0.0 }
 0x1c5   :  { %v247_v43 = vpop.f32.mrf.mxu1 }
 0x1c6   :  { %v251_v44 = vpack.c.bf16 %v250_v42, %v250_v42 }
 0x1c7   :  { %v483_v45 = vpop.f32.mrf.mxu1 }
 0x1c8   :  { %393 = vmatmul.mubr.bf16.vlgmr.msra.gmra.mxu0 %v251_v44 }
 0x288   :  { %v394_v53 = vpop.f32.mrf.mxu0 }
 0x289   :  { %v395_v54 = vadd.f32 %v394_v53, %v273_v51 }
 0x28a   :  { %v396_v55 = vpop.f32.mrf.mxu0 }
 0x28b   :  { %401 = vst [vmem:[#allocation10] sm:$0xff] %v395_v54  ;;  %v397_v56 = vadd.f32 %v396_v55, %v277_v52 }
 0x28c   :  { %v398_v57 = vpop.f32.mrf.mxu0 }
 0x28d   :  { %402 = vst [vmem:[#allocation10 + $0x8] sm:$0xff] %v397_v56 }
 0x28e   :  { %v399_v58 = vpop.f32.mrf.mxu0 }
 0x28f   :  { %619 = shalt.err (!%p616_p10)
}
 0x290   :  { %412 = dma.vmem_to_hbm [thread:$0]  %s410_s26, 256, %s719_s7, [#allocation4]  }
 0x291   :  { %634 = dma.done.wait [#allocation4], 256  }
 0x292   :  { %635 = vsyncadd [#allocation4], 4294967040 }
 0x293   :  { %416 = vsyncpa [#allocation3], 1 }
 0x294   :  { %417 = vsyncpa [#allocation6], 1 }
 0x295   :  { %418 = vsyncpa [#allocation9], 1 }
 0x296   :  { %419 = vsyncpa [#allocation4], 1 }

</bundles_post_ra>
